<compile_context>
chip_gen: v7x
topology: tpu7x:2x2x1
jax: 0.10.0
libtpu: 0.0.40
codegen_flags: <defaults>
</compile_context>

<pallas_src>
import jax
import jax.numpy as jnp
import numpy as np
from jax.experimental import pallas as pl
from jax.experimental.pallas import tpu as pltpu

# ----- model config (matches CNNSpectgram defaults) -----
IN_CHANNELS = 3
BASE_FILTERS = 128             # single-element base_filters -> one Conv1d per branch
KERNEL_SIZES = (32, 16, 4, 2)
STRIDE = 4
SIGMOID = False
OUT_SIZE = None                # no AdaptiveAvgPool2d

K_MAX = max(KERNEL_SIZES)                  # 32
PAD = (K_MAX - 1) // 2                     # 15
K_TOT = IN_CHANNELS * K_MAX                # 96  (shared im2col depth)
N_OUT = len(KERNEL_SIZES) * BASE_FILTERS   # 512 (all branches concatenated on N)
DEFAULT_TL = 1024                          # time-tile; ~4.6 MiB/step VMEM, safe on v7x


def _fused_conv_kernel(w_ref, b_ref, p_ref, o_ref):
    # (N_OUT, K_TOT)bf16 @ (K_TOT, TL)bf16 on the MXU with f32 accumulation,
    # bias broadcast-add on the VPU.  Output is already channel-major.
    acc = jnp.dot(w_ref[...], p_ref[...], preferred_element_type=jnp.float32)
    o_ref[...] = acc + b_ref[...]


def _round_up(x, m):
    return (x + m - 1) // m * m


def _build_fused_weight(params):
    """Embed each branch's (C_out, C_in, k) weight into one (N_OUT, K_TOT) slab."""
    assert len(params) == len(KERNEL_SIZES)
    w_slab = jnp.zeros((N_OUT, IN_CHANNELS, K_MAX), jnp.float32)
    biases = []
    for i, (w, b) in enumerate(params):
        k = w.shape[-1]
        off = PAD - (k - 1) // 2           # centered offset inside the 32-wide window
        w_slab = w_slab.at[i * BASE_FILTERS:(i + 1) * BASE_FILTERS, :, off:off + k].set(w)
        biases.append(b)
    w_mat = w_slab.reshape(N_OUT, K_TOT).astype(jnp.bfloat16)   # (512, 96) bf16
    bias = jnp.concatenate(biases).reshape(N_OUT, 1)            # (512, 1)  f32
    return w_mat, bias


def cnn_spectgram_forward(x, params, *, tl=DEFAULT_TL):
    """x: (B, IN_CHANNELS, T) f32 -> (B, out_chans, BASE_FILTERS, L_out) f32."""
    B, C, T = x.shape
    assert C == IN_CHANNELS
    n_branches = len(params)
    L_out = (T + 2 * PAD - K_MAX) // STRIDE + 1

    # Lane-dense time tile (multiple of 128), capped so double-buffered
    # patches + f32 output tile stay far below v7x's 64 MiB VMEM.
    TL = min(_round_up(tl, 128), _round_up(L_out, 128))
    L_pad = _round_up(L_out, TL)
    n_l = L_pad // TL

    # --- glue (plain JAX): ONE shared im2col for all four branches, in bf16,
    # already in (K, L) layout so no transpose is needed anywhere.
    # TODO(synk): the materialized im2col is still ~K_MAX/STRIDE x larger than x;
    # forming patch rows in VMEM from a phase-split x would cut HBM bytes further.
    need = (L_pad - 1) * STRIDE + K_MAX
    extra = max(0, need - (T + 2 * PAD))
    x_pad = jnp.pad(x, ((0, 0), (0, 0), (PAD, PAD + extra)))
    idx = jnp.arange(K_MAX)[:, None] + STRIDE * jnp.arange(L_pad)[None, :]  # (32, L_pad)
    patches = x_pad[:, :, idx].reshape(B, K_TOT, L_pad).astype(jnp.bfloat16)

    w_mat, bias = _build_fused_weight(params)   # (512, 96) bf16, (512, 1) f32

    cost = pl.CostEstimate(
        flops=2 * B * L_pad * K_TOT * N_OUT,
        transcendentals=0,
        bytes_accessed=(patches.size * 2 + w_mat.size * 2 + bias.size * 4
                        + B * N_OUT * L_pad * 4),
    )

    fused = pl.pallas_call(
        _fused_conv_kernel,
        out_shape=jax.ShapeDtypeStruct((B, N_OUT, L_pad), jnp.float32),
        grid_spec=pltpu.PrefetchScalarGridSpec(
            num_scalar_prefetch=0,
            grid=(B, n_l),
            in_specs=[
                pl.BlockSpec((N_OUT, K_TOT), lambda b, l: (0, 0)),        # resident weight
                pl.BlockSpec((N_OUT, 1), lambda b, l: (0, 0)),            # resident bias
                pl.BlockSpec((None, K_TOT, TL), lambda b, l: (b, 0, l)),  # streamed patches
            ],
            out_specs=pl.BlockSpec((None, N_OUT, TL), lambda b, l: (b, 0, l)),
        ),
        compiler_params=pltpu.CompilerParams(
            dimension_semantics=("parallel", "parallel")),
        cost_estimate=cost,
    )(w_mat, bias, patches)

    # Channel-major layout comes straight from the kernel: splitting 512 -> (4, 128)
    # is a free reshape (no transpose / stack copies).
    img = fused[:, :, :L_out].reshape(B, n_branches, BASE_FILTERS, L_out)

    # OUT_SIZE is None in the default config -> no pooling.
    # TODO(synk): AdaptiveAvgPool2d branch (output_size is not None) not implemented.
    if SIGMOID:
        img = jax.nn.sigmoid(img)
    return img


def init_params(key):
    """Deterministic synthetic init mirroring the module's __init__ shapes."""
    params = []
    for i, k in enumerate(KERNEL_SIZES):
        kw, kb = jax.random.split(jax.random.fold_in(key, i))
        fan_in = IN_CHANNELS * k
        std = (2.0 / fan_in) ** 0.5                    # kaiming_normal_ (fan_in, relu)
        w = std * jax.random.normal(kw, (BASE_FILTERS, IN_CHANNELS, k), jnp.float32)
        bound = 1.0 / (fan_in ** 0.5)                  # PyTorch default Conv1d bias init
        b = jax.random.uniform(kb, (BASE_FILTERS,), jnp.float32, -bound, bound)
        params.append((w, b))
    return params


def _reference(x, params):
    # Matches the kernel's numerics: bf16-rounded inputs, f32 accumulation.
    xb = x.astype(jnp.bfloat16).astype(jnp.float32)
    outs = []
    for (w, b) in params:
        wb = w.astype(jnp.bfloat16).astype(jnp.float32)
        k = w.shape[-1]
        pad = (k - 1) // 2
        y = jax.lax.conv_general_dilated(
            xb, wb, window_strides=(STRIDE,), padding=[(pad, pad)],
            dimension_numbers=("NCH", "OIH", "NCH"),
            precision=jax.lax.Precision.HIGHEST)
        outs.append(y + b[None, :, None])
    return jnp.stack(outs, axis=1)


if __name__ == "__main__":
    key = jax.random.PRNGKey(0)
    kx, kp = jax.random.split(key)

    B, T = 2, 512
    x = jax.random.normal(kx, (B, IN_CHANNELS, T), jnp.float32)
    params = init_params(kp)

    fwd = jax.jit(cnn_spectgram_forward)
    img = jax.block_until_ready(fwd(x, params))

    L_out = (T + 2 * PAD - K_MAX) // STRIDE + 1
    assert img.shape == (B, len(KERNEL_SIZES), BASE_FILTERS, L_out), img.shape

    ref = _reference(x, params)
    np.testing.assert_allclose(np.asarray(img), np.asarray(ref), rtol=1e-2, atol=1e-2)

    print("KERNEL_OK")
</pallas_src>

<mosaic_0001>
module attributes {stable_mosaic.version = 11 : i64} {
  func.func @_fused_conv_kernel(%arg0: i32, %arg1: i32, %arg2: memref<512x96xbf16, #tpu.memory_space<vmem>>, %arg3: memref<512x1xf32, #tpu.memory_space<vmem>>, %arg4: memref<1x96x128xbf16, #tpu.memory_space<vmem>>, %arg5: memref<1x512x128xf32, #tpu.memory_space<vmem>>) attributes {dimension_semantics = [#tpu.dimension_semantics<parallel>, #tpu.dimension_semantics<parallel>], iteration_bounds = array<i64: 2, 1>, scalar_prefetch = 0 : i64, scratch_operands = 0 : i64, tpu.core_type = #tpu.core_type<tc>, window_params = [{pipeline_mode = #tpu.pipeline_mode<synchronous>, transform_indices = @transform_0, window_bounds = array<i64: 512, 96>}, {pipeline_mode = #tpu.pipeline_mode<synchronous>, transform_indices = @transform_1, window_bounds = array<i64: 512, 1>}, {transform_indices = @transform_2, window_bounds = array<i64: 1, 96, 128>}, {transform_indices = @transform_3, window_bounds = array<i64: 1, 512, 128>}]} {
    %c0 = arith.constant 0 : index
    %c0_0 = arith.constant 0 : index
    %0 = vector.load %arg2[%c0, %c0_0] : memref<512x96xbf16, #tpu.memory_space<vmem>>, vector<512x96xbf16>
    %c0_1 = arith.constant 0 : index
    %c0_2 = arith.constant 0 : index
    %c0_3 = arith.constant 0 : index
    %1 = vector.load %arg4[%c0_1, %c0_2, %c0_3] : memref<1x96x128xbf16, #tpu.memory_space<vmem>>, vector<1x96x128xbf16>
    %2 = vector.shape_cast %1 : vector<1x96x128xbf16> to vector<96x128xbf16>
    %cst = arith.constant dense<0.000000e+00> : vector<512x128xf32>
    %3 = tpu.matmul %0, %2, %cst {dimension_numbers = #tpu.dot_dimension_numbers<[1], [0], [0], [1], [0, 0, 1, 1], [], []>} : vector<512x96xbf16>, vector<96x128xbf16>, vector<512x128xf32> -> vector<512x128xf32>
    %c0_4 = arith.constant 0 : index
    %c0_5 = arith.constant 0 : index
    %4 = vector.load %arg3[%c0_4, %c0_5] : memref<512x1xf32, #tpu.memory_space<vmem>>, vector<512x1xf32>
    %5 = vector.broadcast %4 : vector<512x1xf32> to vector<512x128xf32>
    %6 = arith.addf %3, %5 : vector<512x128xf32>
    %c0_6 = arith.constant 0 : index
    %c0_7 = arith.constant 0 : index
    %c0_8 = arith.constant 0 : index
    %7 = vector.load %arg5[%c0_6, %c0_7, %c0_8] : memref<1x512x128xf32, #tpu.memory_space<vmem>>, vector<1x512x128xf32>
    %8 = vector.shape_cast %7 : vector<1x512x128xf32> to vector<512x128xf32>
    %9 = vector.shape_cast %6 : vector<512x128xf32> to vector<1x512x128xf32>
    tpu.vector_store %arg5[%c0_6, %c0_7, %c0_8], %9 {strides = array<i32>} : memref<1x512x128xf32, #tpu.memory_space<vmem>>, vector<1x512x128xf32>,
    return
  }
  func.func @transform_0(%arg0: i32, %arg1: i32) -> (i32, i32) {
    %c0_i32 = arith.constant 0 : i32
    %c0_i32_0 = arith.constant 0 : i32
    %c0_i32_1 = arith.constant 0 : i32
    return %c0_i32, %c0_i32_0 : i32, i32
  }
  func.func @transform_1(%arg0: i32, %arg1: i32) -> (i32, i32) {
    %c0_i32 = arith.constant 0 : i32
    %c0_i32_0 = arith.constant 0 : i32
    %c0_i32_1 = arith.constant 0 : i32
    return %c0_i32, %c0_i32_0 : i32, i32
  }
  func.func @transform_2(%arg0: i32, %arg1: i32) -> (i32, i32, i32) {
    %c0_i32 = arith.constant 0 : i32
    %c0_i32_0 = arith.constant 0 : i32
    return %arg0, %c0_i32, %arg1 : i32, i32, i32
  }
  func.func @transform_3(%arg0: i32, %arg1: i32) -> (i32, i32, i32) {
    %c0_i32 = arith.constant 0 : i32
    %c0_i32_0 = arith.constant 0 : i32
    return %arg0, %c0_i32, %arg1 : i32, i32, i32
  }
}

</mosaic_0001>

<bundles_post_ra>
// kernel: cnn_spectgram_forward.1
= control target key start
LH: loop header
LB: loop body
LE: loop exit
PB: predicated region body
PF: predicated region fallthrough
CT: control target
= control target key end

     0   :  { %8 = vsyncpa [#allocation3], 0  ;;  %s2458_s0 = inlined_call_operand.vmem [shape: bf16[512,96], index: 0, kind: input, shape index: {}]   ;;  %s2459_s1 = inlined_call_operand.vmem [shape: f32[512,1], index: 1, kind: input, shape index: {}]   ;;  %s2460_s2 = inlined_call_operand.vmem [shape: bf16[2,96,128], index: 2, kind: input, shape index: {}]   ;;  %s2461_s3 = inlined_call_operand.hbm [shape: f32[2,512,128], index: 3, kind: output, shape index: {}]  }
   0x1   :  { %10 = vsyncpa [#allocation3 + $0x1], 0  ;;  %s1806_s12 = smov 0   ;;  %s1808_s13 = smov 0  }
   0x2   :  { %s1810_s14 = smov 0   ;;  %s1812_s15 = smov 0  }
   0x3   :  { %s1814_s16 = smov 0   ;;  %s1816_s17 = smov 0  }
   0x4 LB: > { %s1394_s18 = sadd.s32 4294967295, %s1780_s17   ;;  %s1395_s19 = sadd.s32 4294967294, %s1780_s17   ;;  %s1780_s17 = sphi %s1816_s17, %s16_s17   ;;  %s1776_s16 = sphi %s1814_s16, %s2468_s16   ;;  %s1772_s15 = sphi %s1812_s15, %s2467_s15   ;;  %s1768_s14 = sphi %s1810_s14, %s2466_s14   ;;  %s1764_s13 = sphi %s1808_s13, %s2465_s13   ;;  %s1760_s12 = sphi %s1806_s12, %s2464_s12  }
   0x5   : > { %s28_s20 = sadd.s32 1, %s1776_s16  ;;  %s107_s21 = sadd.s32 1, %s1768_s14 }
   0x6   : > { %p30_p0 = scmp.ge.s32.totalorder %s28_s20, 2  ;;  %p117_p1 = scmp.ne.s32.totalorder %s1768_s14, %s1764_s13 }
   0x7   : > { %p118_p2 = scmp.eq.s32.totalorder %s1394_s18, 1  ;;  %p123_p3 = scmp.ne.s32.totalorder %s1764_s13, %s1760_s12 }
   0x8   : > { %s2470_s20 = smov (%p30_p0, %s28_s20), 0  ;;  %p124_p5 = scmp.eq.s32.totalorder %s1395_s19, 1 }
   0x9   : > { %p1846_p4 = por %p118_p2, %p117_p1  ;;  %s102_s23 = ssub.s32 %s1776_s16, %s2470_s20 }
   0xa   : > { %p1398_p6 = scmp.ge.s32.totalorder %s1780_s17, 1  ;;  %p105_p7 = scmp.eq.s32.totalorder %s102_s23, 0 }
   0xb   : > { %p1853_p8 = por %p124_p5, %p123_p3  ;;  %p159_p9 = scmp.lt.s32.totalorder %s1780_s17, 3 }
   0xc   : > { %s1859_s25 = scalar_select %p105_p7, %s1768_s14, %s107_s21  }
   0xd   : > { %p160_p10 = pnand %p1398_p6, %p159_p9 }
   0xe   : > { %v273_v0 = vld [vmem:[%s2459_s1 + $0x10] sm:$0xff] (!%p160_p10)  ;;  %v271_v1 = vld [vmem:[%s2459_s1] sm:$0xff] (!%p160_p10)  ;;  %p186_p11 = scmp.lt.s32.totalorder (!%p160_p10), %s1772_s15, 1  ;;  %v1782_v2 = vmov (!%p160_p10), 0   ;;  %v274_v3 = vld [vmem:[%s2459_s1 + $0x18] sm:$0xff] (!%p160_p10)  ;;  %vm851_vm0 = vcmask (!%p160_p10), 785408  }
   0xf   : > { %163 = sbr.rel (%p160_p10) target bundleno = 340 (0x154), region = 32  ;;  %1663 = vset.pattern.permute.xlu1 (!%p160_p10), %v1782_v2  ;;  %1662 = vset.pattern.permute.xlu0 (!%p160_p10), %v1782_v2  ;;  %v272_v4 = vld [vmem:[%s2459_s1 + $0x8] sm:$0xff] (!%p160_p10)  ;;  %v275_v6 = vld [vmem:[%s2459_s1 + $0x20] sm:$0xff] (!%p160_p10)  ;;  %v278_v10 = vld [vmem:[%s2459_s1 + $0x38] sm:$0xff] (!%p160_p10)  ;;  %s1476_s18 = sshll.u32 (!%p160_p10), %s1772_s15, 13 }
  0x10   : > { %347 = vperm.xlu1 (!%p160_p10), %1663, %v273_v0   ;;  %337 = vperm.xlu0 (!%p160_p10), %1662, %v271_v1   ;;  %v276_v5 = vld [vmem:[%s2459_s1 + $0x28] sm:$0xff] (!%p160_p10)  ;;  %v1670_v7 = vld [vmem:[%s2458_s0] sm:$0xff] (!%p160_p10)   ;;  %v277_v11 = vld [vmem:[%s2459_s1 + $0x30] sm:$0xff] (!%p160_p10)  ;;  %s2399_s26 = scalar_lea.hbm (!%p160_p10), %s2461_s3, %s1476_s18  ;;  %s1783_s29 = smov (!%p160_p10), [#allocation2]  }
  0x11   : > { %1527 = vmatprep.mubr.msk.bf16.mxu0 (!%p160_p10), %vm851_vm0, %v1670_v7  ;;  %v1671_v13 = vld [vmem:[%s2458_s0 + $0x80] sm:$0xff] (!%p160_p10)   ;;  %v280_v14 = vld [vmem:[%s2459_s1 + $0x48] sm:$0xff] (!%p160_p10)  ;;  %v282_v17 = vld [vmem:[%s2459_s1 + $0x58] sm:$0xff] (!%p160_p10) }
  0x12   : > { %v279_v15 = vld [vmem:[%s2459_s1 + $0x40] sm:$0xff] (!%p160_p10)  ;;  %1559 = vmatprep.mubr.msk.bf16.mxu1 (!%p160_p10), %vm851_vm0, %v1671_v13  ;;  %v281_v18 = vld [vmem:[%s2459_s1 + $0x50] sm:$0xff] (!%p160_p10)  ;;  %v284_v20 = vld [vmem:[%s2459_s1 + $0x68] sm:$0xff] (!%p160_p10) }
  0x13   : > { %v283_v21 = vld [vmem:[%s2459_s1 + $0x60] sm:$0xff] (!%p160_p10)  ;;  %v286_v23 = vld [vmem:[%s2459_s1 + $0x78] sm:$0xff] (!%p160_p10)  ;;  %v285_v24 = vld [vmem:[%s2459_s1 + $0x70] sm:$0xff] (!%p160_p10) }
  0x14   : > { %352 = vperm.xlu1 (!%p160_p10), %1663, %v274_v3   ;;  %342 = vperm.xlu0 (!%p160_p10), %1662, %v272_v4   ;;  %v288_v25 = vld [vmem:[%s2459_s1 + $0x88] sm:$0xff] (!%p160_p10)  ;;  %v287_v26 = vld [vmem:[%s2459_s1 + $0x80] sm:$0xff] (!%p160_p10)  ;;  %v1674_v29 = vld [vmem:[%s2458_s0 + $0x10] sm:$0xff] (!%p160_p10)  }
  0x15   : > { %v1672_v27 = vld [vmem:[%s2458_s0 + $0x8] sm:$0xff] (!%p160_p10)   ;;  %v1675_v30 = vld [vmem:[%s2458_s0 + $0x90] sm:$0xff] (!%p160_p10)   ;;  %v290_v31 = vld [vmem:[%s2459_s1 + $0x98] sm:$0xff] (!%p160_p10) }
  0x16   : > { %s187_s30 = scalar_select %p186_p11, %s1772_s15, 1  ;;  %v1673_v28 = vld [vmem:[%s2458_s0 + $0x88] sm:$0xff]   ;;  %v289_v32 = vld [vmem:[%s2459_s1 + $0x90] sm:$0xff]  ;;  %v291_v34 = vld [vmem:[%s2459_s1 + $0xa0] sm:$0xff] }
  0x17   : > { %v292_v33 = vld [vmem:[%s2459_s1 + $0xa8] sm:$0xff]  ;;  %v1676_v35 = vld [vmem:[%s2458_s0 + $0x18] sm:$0xff]   ;;  %v1678_v37 = vld [vmem:[%s2458_s0 + $0x20] sm:$0xff]  }
  0x18   : > { %s1603_s8 = smul.u32 48, %s187_s30  ;;  %362 = vperm.xlu1 %1663, %v276_v5   ;;  %357 = vperm.xlu0 %1662, %v275_v6   ;;  %v1677_v36 = vld [vmem:[%s2458_s0 + $0x98] sm:$0xff]   ;;  %v1679_v38 = vld [vmem:[%s2458_s0 + $0xa0] sm:$0xff]   ;;  %v293_v40 = vld [vmem:[%s2459_s1 + $0xb0] sm:$0xff]  ;;  %s1706_s30 = sshll.u32 %s1783_s29, 4  ;;  %s1707_s30 = int_to_ptr.vmem [resolvable:$false] %s1706_s30 }
  0x19   : > { %v294_v39 = vld [vmem:[%s2459_s1 + $0xb8] sm:$0xff]  ;;  %v296_v41 = vld [vmem:[%s2459_s1 + $0xc8] sm:$0xff]  ;;  %v295_v42 = vld [vmem:[%s2459_s1 + $0xc0] sm:$0xff]  ;;  %s1708_s4 = scalar_lea.vmem %s1707_s30, 16384 }
  0x1a   : > { %s1884_s23 = scalar_lea.vmem %s2460_s2, %s1603_s8  ;;  %v1680_v43 = vld [vmem:[%s2458_s0 + $0x28] sm:$0xff]   ;;  %v1682_v45 = vld [vmem:[%s2458_s0 + $0x30] sm:$0xff]   ;;  %v298_v47 = vld [vmem:[%s2459_s1 + $0xd8] sm:$0xff] }
  0x1b   : > { %v1664_v8 = vld [vmem:[%s1884_s23] sm:$0xff]   ;;  %v1665_v9 = vld [vmem:[%s1884_s23 + $0x8] sm:$0xff]   ;;  %v1666_v12 = vld [vmem:[%s1884_s23 + $0x10] sm:$0xff]  }
  0x1c   : > { %1515 = vmatprep.subr.bf16.mxu0 %v1664_v8  ;;  %1591 = vmatprep.subr.bf16.mxu1 %v1664_v8  ;;  %v1667_v16 = vld [vmem:[%s1884_s23 + $0x18] sm:$0xff]   ;;  %v1668_v19 = vld [vmem:[%s1884_s23 + $0x20] sm:$0xff]   ;;  %v1669_v22 = vld [vmem:[%s1884_s23 + $0x28] sm:$0xff]   ;;  %s183_s23 = sand.u32 1, %s1764_s13  }
  0x1d   : > { %1516 = vmatpush3.bf16.msra.mxu0 %v1664_v8  ;;  %1597 = vmatpush3.bf16.msra.mxu1 %v1664_v8  ;;  %v1681_v44 = vld [vmem:[%s2458_s0 + $0xa8] sm:$0xff]   ;;  %v1683_v46 = vld [vmem:[%s2458_s0 + $0xb0] sm:$0xff]   ;;  %v299_v50 = vld [vmem:[%s2459_s1 + $0xe0] sm:$0xff]  ;;  %s1399_s10 = sshll.u32 %s183_s23, 9  ;;  %s2412_s27 = scalar_lea.sflag [#allocation3], %s183_s23 }
  0x1e   : > { %1517 = vmatprep.subr.bf16.mxu0 %v1665_v9  ;;  %1592 = vmatprep.subr.bf16.mxu1 %v1665_v9  ;;  %v297_v48 = vld [vmem:[%s2459_s1 + $0xd0] sm:$0xff]  ;;  %v300_v49 = vld [vmem:[%s2459_s1 + $0xe8] sm:$0xff]  ;;  %v1684_v51 = vld [vmem:[%s2458_s0 + $0x38] sm:$0xff]   ;;  %s2277_s11 = scalar_lea.vmem [#allocation2], %s1399_s10 }
  0x1f   : > { %372 = vperm.xlu1 %1663, %v278_v10   ;;  %367 = vperm.xlu0 %1662, %v277_v11   ;;  %v1685_v52 = vld [vmem:[%s2458_s0 + $0xb8] sm:$0xff]   ;;  %v1686_v53 = vld [vmem:[%s2458_s0 + $0x40] sm:$0xff]   ;;  %v301_v56 = vld [vmem:[%s2459_s1 + $0xf0] sm:$0xff]  ;;  %s1316_s19 = sshll.u32 %s2277_s11, 4  ;;  %s2401_s19 = int_to_ptr.vmem [resolvable:$true] %s1316_s19 }
  0x20   : > { %v1687_v54 = vld [vmem:[%s2458_s0 + $0xc0] sm:$0xff]   ;;  %v302_v55 = vld [vmem:[%s2459_s1 + $0xf8] sm:$0xff]  ;;  %v304_v57 = vld [vmem:[%s2459_s1 + $0x108] sm:$0xff]  ;;  %s1702_s28 = scalar_lea.vmem %s2401_s19, 8192  ;;  %p1709_p1 = scmp.lt.s32.totalorder %s2401_s19, %s1707_s30 }
  0x21   : > { %1518 = vmatpush3.bf16.msra.mxu0 %v1665_v9  ;;  %1598 = vmatpush3.bf16.msra.mxu1 %v1665_v9  ;;  %v303_v58 = vld [vmem:[%s2459_s1 + $0x100] sm:$0xff]  ;;  %v1688_v59 = vld [vmem:[%s2458_s0 + $0x48] sm:$0xff]   ;;  %v1690_v61 = vld [vmem:[%s2458_s0 + $0x50] sm:$0xff]   ;;  %p1703_p12 = scmp.ne.s32.totalorder %s2401_s19, %s1702_s28  ;;  %p1710_p2 = scmp.lt.s32.totalorder %s1708_s4, %s1702_s28 }
  0x22   : > { %1519 = vmatprep.subr.bf16.mxu0 %v1666_v12  ;;  %1593 = vmatprep.subr.bf16.mxu1 %v1666_v12  ;;  %v1689_v60 = vld [vmem:[%s2458_s0 + $0xc8] sm:$0xff]   ;;  %v1691_v62 = vld [vmem:[%s2458_s0 + $0xd0] sm:$0xff]   ;;  %v306_v63 = vld [vmem:[%s2459_s1 + $0x118] sm:$0xff] }
  0x23   : > { %382 = vperm.xlu1 %1663, %v280_v14   ;;  %377 = vperm.xlu0 %1662, %v279_v15   ;;  %v305_v0 = vld [vmem:[%s2459_s1 + $0x110] sm:$0xff]  ;;  %v308_v1 = vld [vmem:[%s2459_s1 + $0x128] sm:$0xff]  ;;  %v307_v2 = vld [vmem:[%s2459_s1 + $0x120] sm:$0xff]  ;;  %p1704_p13 = pnand %p1703_p12, %p1846_p4  ;;  %p1711_p3 = por %p1710_p2, %p1709_p1 }
  0x24   : > { %v1692_v3 = vld [vmem:[%s2458_s0 + $0x58] sm:$0xff]   ;;  %v1694_v5 = vld [vmem:[%s2458_s0 + $0x60] sm:$0xff]   ;;  %v309_v8 = vld [vmem:[%s2459_s1 + $0x130] sm:$0xff] }
  0x25   : > { %1520 = vmatpush3.bf16.msra.mxu0 %v1666_v12  ;;  %1599 = vmatpush3.bf16.msra.mxu1 %v1666_v12  ;;  %v1693_v4 = vld [vmem:[%s2458_s0 + $0xd8] sm:$0xff]   ;;  %v1695_v6 = vld [vmem:[%s2458_s0 + $0xe0] sm:$0xff]   ;;  %v312_v9 = vld [vmem:[%s2459_s1 + $0x148] sm:$0xff]  ;;  %p1705_p0 = pneg %p1704_p13 }
  0x26   : > { %1521 = vmatprep.subr.bf16.mxu0 %v1667_v16  ;;  %1594 = vmatprep.subr.bf16.mxu1 %v1667_v16  ;;  %v310_v7 = vld [vmem:[%s2459_s1 + $0x138] sm:$0xff]  ;;  %v311_v10 = vld [vmem:[%s2459_s1 + $0x140] sm:$0xff]  ;;  %v1696_v11 = vld [vmem:[%s2458_s0 + $0x68] sm:$0xff]  }
  0x27   : > { %392 = vperm.xlu1 %1663, %v282_v17   ;;  %387 = vperm.xlu0 %1662, %v281_v18   ;;  %v1697_v12 = vld [vmem:[%s2458_s0 + $0xe8] sm:$0xff]   ;;  %v1698_v13 = vld [vmem:[%s2458_s0 + $0x70] sm:$0xff]   ;;  %v314_v15 = vld [vmem:[%s2459_s1 + $0x158] sm:$0xff]  ;;  %p1712_p5 = pnand %p1711_p3, %p1705_p0 }
  0x28   : > { %v1699_v14 = vld [vmem:[%s2458_s0 + $0xf0] sm:$0xff]   ;;  %v316_v17 = vld [vmem:[%s2459_s1 + $0x168] sm:$0xff]  ;;  %v315_v18 = vld [vmem:[%s2459_s1 + $0x160] sm:$0xff] }
  0x29   : > { %1522 = vmatpush3.bf16.msra.mxu0 %v1667_v16  ;;  %1600 = vmatpush3.bf16.msra.mxu1 %v1667_v16  ;;  %v313_v16 = vld [vmem:[%s2459_s1 + $0x150] sm:$0xff] }
  0x2a   : > { %1523 = vmatprep.subr.bf16.mxu0 %v1668_v19  ;;  %1595 = vmatprep.subr.bf16.mxu1 %v1668_v19 }
  0x2b   : > { %402 = vperm.xlu1 %1663, %v284_v20   ;;  %397 = vperm.xlu0 %1662, %v283_v21   ;;  %v1701_v20 = vld [vmem:[%s2458_s0 + $0xf8] sm:$0xff]  }
  0x2c   : > { %v318_v21 = vld [vmem:[%s2459_s1 + $0x178] sm:$0xff] }
  0x2d   : > { %1524 = vmatpush3.bf16.msra.mxu0 %v1668_v19  ;;  %1601 = vmatpush3.bf16.msra.mxu1 %v1668_v19  ;;  %v1700_v19 = vld [vmem:[%s2458_s0 + $0x78] sm:$0xff]  }
  0x2e   : > { %1525 = vmatprep.subr.bf16.mxu0 %v1669_v22  ;;  %1596 = vmatprep.subr.bf16.mxu1 %v1669_v22 }
  0x2f   : > { %412 = vperm.xlu1 %1663, %v286_v23   ;;  %407 = vperm.xlu0 %1662, %v285_v24   ;;  %v320_v23 = vld [vmem:[%s2459_s1 + $0x188] sm:$0xff]  ;;  %v319_v24 = vld [vmem:[%s2459_s1 + $0x180] sm:$0xff] }
  0x31   : > { %1526 = vmatpush3.bf16.msra.mxu0 %v1669_v22  ;;  %1602 = vmatpush3.bf16.msra.mxu1 %v1669_v22  ;;  %v317_v22 = vld [vmem:[%s2459_s1 + $0x170] sm:$0xff] }
  0x33   : > { %422 = vperm.xlu1 %1663, %v288_v25   ;;  %417 = vperm.xlu0 %1662, %v287_v26   ;;  %v322_v25 = vld [vmem:[%s2459_s1 + $0x198] sm:$0xff]  ;;  %v321_v26 = vld [vmem:[%s2459_s1 + $0x190] sm:$0xff] }
  0x34   : > { %1528 = vmatmul.mubr.msk.bf16.vlgmr.msra.gmra.mrb[0].mxu0 %vm851_vm0, %v1672_v27  ;;  %1560 = vmatmul.mubr.msk.bf16.vlgmr.msra.gmra.mrb[0].mxu1 %vm851_vm0, %v1673_v28  ;;  %v324_v27 = vld [vmem:[%s2459_s1 + $0x1a8] sm:$0xff]  ;;  %v323_v28 = vld [vmem:[%s2459_s1 + $0x1a0] sm:$0xff] }
  0x35   : > { %1531 = vmatprep.mubr.msk.bf16.mxu0 %vm851_vm0, %v1674_v29  ;;  %1563 = vmatprep.mubr.msk.bf16.mxu1 %vm851_vm0, %v1675_v30  ;;  %v326_v29 = vld [vmem:[%s2459_s1 + $0x1b8] sm:$0xff]  ;;  %v325_v30 = vld [vmem:[%s2459_s1 + $0x1b0] sm:$0xff] }
  0x37   : > { %432 = vperm.xlu1 %1663, %v290_v31   ;;  %427 = vperm.xlu0 %1662, %v289_v32   ;;  %v328_v31 = vld [vmem:[%s2459_s1 + $0x1c8] sm:$0xff]  ;;  %v327_v32 = vld [vmem:[%s2459_s1 + $0x1c0] sm:$0xff] }
  0x3b   : > { %442 = vperm.xlu1 %1663, %v292_v33   ;;  %437 = vperm.xlu0 %1662, %v291_v34   ;;  %v330_v33 = vld [vmem:[%s2459_s1 + $0x1d8] sm:$0xff]  ;;  %v329_v34 = vld [vmem:[%s2459_s1 + $0x1d0] sm:$0xff] }
  0x3c   : > { %1532 = vmatmul.mubr.msk.bf16.gmra.mrb[4].mxu0 %vm851_vm0, %v1676_v35  ;;  %1564 = vmatmul.mubr.msk.bf16.gmra.mrb[4].mxu1 %vm851_vm0, %v1677_v36  ;;  %v332_v35 = vld [vmem:[%s2459_s1 + $0x1e8] sm:$0xff]  ;;  %v331_v36 = vld [vmem:[%s2459_s1 + $0x1e0] sm:$0xff] }
  0x3d   : > { %1535 = vmatprep.mubr.msk.bf16.mxu0 %vm851_vm0, %v1678_v37  ;;  %1567 = vmatprep.mubr.msk.bf16.mxu1 %vm851_vm0, %v1679_v38  ;;  %v334_v37 = vld [vmem:[%s2459_s1 + $0x1f8] sm:$0xff]  ;;  %v333_v38 = vld [vmem:[%s2459_s1 + $0x1f0] sm:$0xff] }
  0x3f   : > { %452 = vperm.xlu1 %1663, %v294_v39   ;;  %447 = vperm.xlu0 %1662, %v293_v40  }
  0x43   : > { %462 = vperm.xlu1 %1663, %v296_v41   ;;  %457 = vperm.xlu0 %1662, %v295_v42  }
  0x44   : > { %1536 = vmatmul.mubr.msk.bf16.gmra.mrb[8].mxu0 %vm851_vm0, %v1680_v43  ;;  %1568 = vmatmul.mubr.msk.bf16.gmra.mrb[8].mxu1 %vm851_vm0, %v1681_v44 }
  0x45   : > { %1539 = vmatprep.mubr.msk.bf16.mxu0 %vm851_vm0, %v1682_v45  ;;  %1571 = vmatprep.mubr.msk.bf16.mxu1 %vm851_vm0, %v1683_v46 }
  0x47   : > { %472 = vperm.xlu1 %1663, %v298_v47   ;;  %467 = vperm.xlu0 %1662, %v297_v48  }
  0x4b   : > { %482 = vperm.xlu1 %1663, %v300_v49   ;;  %477 = vperm.xlu0 %1662, %v299_v50  }
  0x4c   : > { %1540 = vmatmul.mubr.msk.bf16.gmra.mrb[12].mxu0 %vm851_vm0, %v1684_v51  ;;  %1572 = vmatmul.mubr.msk.bf16.gmra.mrb[12].mxu1 %vm851_vm0, %v1685_v52 }
  0x4d   : > { %1543 = vmatprep.mubr.msk.bf16.mxu0 %vm851_vm0, %v1686_v53  ;;  %1575 = vmatprep.mubr.msk.bf16.mxu1 %vm851_vm0, %v1687_v54 }
  0x4f   : > { %492 = vperm.xlu1 %1663, %v302_v55   ;;  %487 = vperm.xlu0 %1662, %v301_v56  }
  0x53   : > { %502 = vperm.xlu1 %1663, %v304_v57   ;;  %497 = vperm.xlu0 %1662, %v303_v58  }
  0x54   : > { %1544 = vmatmul.mubr.msk.bf16.gmra.mrb[16].mxu0 %vm851_vm0, %v1688_v59  ;;  %1576 = vmatmul.mubr.msk.bf16.gmra.mrb[16].mxu1 %vm851_vm0, %v1689_v60 }
  0x55   : > { %1547 = vmatprep.mubr.msk.bf16.mxu0 %vm851_vm0, %v1690_v61  ;;  %1579 = vmatprep.mubr.msk.bf16.mxu1 %vm851_vm0, %v1691_v62 }
  0x57   : > { %512 = vperm.xlu1 %1663, %v306_v63   ;;  %507 = vperm.xlu0 %1662, %v305_v0  }
  0x5b   : > { %522 = vperm.xlu1 %1663, %v308_v1   ;;  %517 = vperm.xlu0 %1662, %v307_v2  }
  0x5c   : > { %1548 = vmatmul.mubr.msk.bf16.gmra.mrb[20].mxu0 %vm851_vm0, %v1692_v3  ;;  %1580 = vmatmul.mubr.msk.bf16.gmra.mrb[20].mxu1 %vm851_vm0, %v1693_v4 }
  0x5d   : > { %1551 = vmatprep.mubr.msk.bf16.mxu0 %vm851_vm0, %v1694_v5  ;;  %1583 = vmatprep.mubr.msk.bf16.mxu1 %vm851_vm0, %v1695_v6 }
  0x5f   : > { %532 = vperm.xlu1 %1663, %v310_v7   ;;  %527 = vperm.xlu0 %1662, %v309_v8  }
  0x63   : > { %542 = vperm.xlu1 %1663, %v312_v9   ;;  %537 = vperm.xlu0 %1662, %v311_v10  }
  0x64   : > { %1552 = vmatmul.mubr.msk.bf16.gmra.mrb[24].mxu0 %vm851_vm0, %v1696_v11  ;;  %1584 = vmatmul.mubr.msk.bf16.gmra.mrb[24].mxu1 %vm851_vm0, %v1697_v12 }
  0x65   : > { %1555 = vmatprep.mubr.msk.bf16.mxu0 %vm851_vm0, %v1698_v13  ;;  %1587 = vmatprep.mubr.msk.bf16.mxu1 %vm851_vm0, %v1699_v14 }
  0x67   : > { %552 = vperm.xlu1 %1663, %v314_v15   ;;  %547 = vperm.xlu0 %1662, %v313_v16  }
  0x6b   : > { %562 = vperm.xlu1 %1663, %v316_v17   ;;  %557 = vperm.xlu0 %1662, %v315_v18  }
  0x6c   : > { %1556 = vmatmul.mubr.msk.bf16.gmra.mrb[28].mxu0 %vm851_vm0, %v1700_v19  ;;  %1588 = vmatmul.mubr.msk.bf16.gmra.mrb[28].mxu1 %vm851_vm0, %v1701_v20 }
  0x6f   : > { %572 = vperm.xlu1 %1663, %v318_v21   ;;  %567 = vperm.xlu0 %1662, %v317_v22  }
  0x73   : > { %582 = vperm.xlu1 %1663, %v320_v23   ;;  %577 = vperm.xlu0 %1662, %v319_v24  }
  0x77   : > { %592 = vperm.xlu1 %1663, %v322_v25   ;;  %587 = vperm.xlu0 %1662, %v321_v26  }
  0x7b   : > { %602 = vperm.xlu1 %1663, %v324_v27   ;;  %597 = vperm.xlu0 %1662, %v323_v28  }
  0x7f   : > { %612 = vperm.xlu1 %1663, %v326_v29   ;;  %607 = vperm.xlu0 %1662, %v325_v30  }
  0x83   : > { %622 = vperm.xlu1 %1663, %v328_v31   ;;  %617 = vperm.xlu0 %1662, %v327_v32  }
  0x87   : > { %632 = vperm.xlu1 %1663, %v330_v33   ;;  %627 = vperm.xlu0 %1662, %v329_v34  }
  0x8b   : > { %642 = vperm.xlu1 %1663, %v332_v35   ;;  %637 = vperm.xlu0 %1662, %v331_v36  }
  0x8f   : > { %652 = vperm.xlu1 %1663, %v334_v37   ;;  %647 = vperm.xlu0 %1662, %v333_v38   ;;  %v348_v39 = vpop.permute.xlu1 %347  ;;  %v338_v40 = vpop.permute.xlu0 %337 }
  0x93   : > { %v2194_v41 = vpop.permute.xlu1 %352  ;;  %v2196_v42 = vpop.permute.xlu0 %342 }
  0x97   : > { %v2198_v43 = vpop.permute.xlu1 %362  ;;  %v2200_v44 = vpop.permute.xlu0 %357 }
  0x9e   : > { %v2202_v45 = vpop.permute.xlu1 %372  ;;  %v2204_v46 = vpop.permute.xlu0 %367 }
  0xa2   : > { %v2206_v47 = vpop.permute.xlu1 %382  ;;  %v2208_v48 = vpop.permute.xlu0 %377 }
  0xa6   : > { %v2210_v49 = vpop.permute.xlu1 %392  ;;  %v2212_v50 = vpop.permute.xlu0 %387 }
  0xaa   : > { %v2214_v51 = vpop.permute.xlu1 %402  ;;  %v2216_v52 = vpop.permute.xlu0 %397 }
  0xae   : > { %v2218_v53 = vpop.permute.xlu1 %412  ;;  %v2220_v54 = vpop.permute.xlu0 %407 }
  0xb2   : > { %v2222_v55 = vpop.permute.xlu1 %422  ;;  %v2224_v56 = vpop.permute.xlu0 %417 }
  0xb6   : > { %v2226_v57 = vpop.permute.xlu1 %432  ;;  %v2228_v58 = vpop.permute.xlu0 %427 }
  0xba   : > { %v2230_v59 = vpop.permute.xlu1 %442  ;;  %v2232_v60 = vpop.permute.xlu0 %437 }
  0xbe   : > { %v2234_v61 = vpop.permute.xlu1 %452  ;;  %v2236_v62 = vpop.permute.xlu0 %447 }
  0xc2   : > { %v2238_v63 = vpop.permute.xlu1 %462  ;;  %v2240_v0 = vpop.permute.xlu0 %457 }
  0xc6   : > { %v2242_v1 = vpop.permute.xlu1 %472  ;;  %v2244_v2 = vpop.permute.xlu0 %467 }
  0xca   : > { %v2246_v3 = vpop.permute.xlu1 %482  ;;  %v2248_v4 = vpop.permute.xlu0 %477 }
  0xce   : > { %v2250_v5 = vpop.permute.xlu1 %492  ;;  %v2252_v6 = vpop.permute.xlu0 %487 }
  0xd2   : > { %v503_v7 = vpop.permute.xlu1 %502  ;;  %v498_v8 = vpop.permute.xlu0 %497 }
  0xd6   : > { %v513_v9 = vpop.permute.xlu1 %512  ;;  %v508_v10 = vpop.permute.xlu0 %507 }
  0xda   : > { %v523_v11 = vpop.permute.xlu1 %522  ;;  %v518_v12 = vpop.permute.xlu0 %517 }
  0xde   : > { %v533_v13 = vpop.permute.xlu1 %532  ;;  %v528_v14 = vpop.permute.xlu0 %527 }
  0xe2   : > { %v2254_v15 = vpop.permute.xlu1 %542  ;;  %v2256_v16 = vpop.permute.xlu0 %537 }
  0xe6   : > { %v2258_v17 = vpop.permute.xlu1 %552  ;;  %v2260_v18 = vpop.permute.xlu0 %547 }
  0xea   : > { %v2262_v19 = vpop.permute.xlu1 %562  ;;  %v2264_v20 = vpop.permute.xlu0 %557 }
  0xee   : > { %v2266_v21 = vpop.permute.xlu1 %572  ;;  %v2268_v22 = vpop.permute.xlu0 %567 }
  0xf2   : > { %v2273_v23 = vpop.permute.xlu1 %582  ;;  %v2275_v24 = vpop.permute.xlu0 %577 }
 0x107   : > { %v1529_v25 = vpop.f32.mrb[0].mxu0  ;;  %v1561_v26 = vpop.f32.mrb[0].mxu1 }
 0x108   : > { %v991_v27 = vadd.f32 %v1529_v25, %v348_v39  ;;  %v1119_v28 = vadd.f32 %v1561_v26, %v508_v10  ;;  %v982_v29 = vpop.f32.mrb[1].mxu0  ;;  %v1110_v30 = vpop.f32.mrb[1].mxu1 }
 0x109   : > { %v983_v31 = vadd.f32 %v982_v29, %v338_v40  ;;  %v1111_v32 = vadd.f32 %v1110_v30, %v498_v8  ;;  %v1530_v33 = vpop.f32.mrb[2].mxu0  ;;  %v1562_v34 = vpop.f32.mrb[2].mxu1 }
 0x10a   : > { %1239 = vst [vmem:[%s2277_s11 + $0x10] sm:$0xff] %v991_v27  ;;  %1271 = vst [vmem:[%s2277_s11 + $0x110] sm:$0xff] %v1119_v28  ;;  %v994_v35 = vadd.f32 %v1530_v33, %v2194_v41  ;;  %v1122_v36 = vadd.f32 %v1562_v34, %v513_v9  ;;  %v985_v37 = vpop.f32.mrb[3].mxu0  ;;  %v1113_v38 = vpop.f32.mrb[3].mxu1 }
 0x10b   : > { %1237 = vst [vmem:[%s2277_s11] sm:$0xff] %v983_v31  ;;  %1269 = vst [vmem:[%s2277_s11 + $0x100] sm:$0xff] %v1111_v32  ;;  %v986_v39 = vadd.f32 %v985_v37, %v2196_v42  ;;  %v1114_v40 = vadd.f32 %v1113_v38, %v503_v7  ;;  %v2289_v8 = vpop.permute.xlu1 %592  ;;  %v2291_v10 = vpop.permute.xlu0 %587 }
 0x10c   : > { %1240 = vst [vmem:[%s2277_s11 + $0x18] sm:$0xff] %v994_v35  ;;  %1272 = vst [vmem:[%s2277_s11 + $0x118] sm:$0xff] %v1122_v36 }
 0x10d   : > { %1238 = vst [vmem:[%s2277_s11 + $0x8] sm:$0xff] %v986_v39  ;;  %1270 = vst [vmem:[%s2277_s11 + $0x108] sm:$0xff] %v1114_v40 }
 0x10f   : > { %v1533_v25 = vpop.f32.mrb[4].mxu0  ;;  %v1565_v41 = vpop.f32.mrb[4].mxu1 }
 0x110   : > { %v1007_v9 = vadd.f32 %v1533_v25, %v2204_v46  ;;  %v1135_v26 = vadd.f32 %v1565_v41, %v528_v14  ;;  %v998_v27 = vpop.f32.mrb[5].mxu0  ;;  %v1126_v42 = vpop.f32.mrb[5].mxu1 }
 0x111   : > { %v999_v7 = vadd.f32 %v998_v27, %v2200_v44  ;;  %v1127_v28 = vadd.f32 %v1126_v42, %v518_v12  ;;  %v1534_v29 = vpop.f32.mrb[6].mxu0  ;;  %v1566_v30 = vpop.f32.mrb[6].mxu1 }
 0x112   : > { %1243 = vst [vmem:[%s2277_s11 + $0x30] sm:$0xff] %v1007_v9  ;;  %1275 = vst [vmem:[%s2277_s11 + $0x130] sm:$0xff] %v1135_v26  ;;  %v1010_v31 = vadd.f32 %v1534_v29, %v2202_v45  ;;  %v1138_v32 = vadd.f32 %v1566_v30, %v533_v13  ;;  %v1001_v33 = vpop.f32.mrb[7].mxu0  ;;  %v1129_v34 = vpop.f32.mrb[7].mxu1 }
 0x113   : > { %1241 = vst [vmem:[%s2277_s11 + $0x20] sm:$0xff] %v999_v7  ;;  %1273 = vst [vmem:[%s2277_s11 + $0x120] sm:$0xff] %v1127_v28  ;;  %v1002_v46 = vadd.f32 %v1001_v33, %v2198_v43  ;;  %v1130_v14 = vadd.f32 %v1129_v34, %v523_v11  ;;  %v2303_v44 = vpop.permute.xlu1 %602  ;;  %v2305_v12 = vpop.permute.xlu0 %597 }
 0x114   : > { %1244 = vst [vmem:[%s2277_s11 + $0x38] sm:$0xff] %v1010_v31  ;;  %1276 = vst [vmem:[%s2277_s11 + $0x138] sm:$0xff] %v1138_v32 }
 0x115   : > { %1242 = vst [vmem:[%s2277_s11 + $0x28] sm:$0xff] %v1002_v46  ;;  %1274 = vst [vmem:[%s2277_s11 + $0x128] sm:$0xff] %v1130_v14 }
 0x117   : > { %v1537_v35 = vpop.f32.mrb[8].mxu0  ;;  %v1569_v45 = vpop.f32.mrb[8].mxu1 }
 0x118   : > { %v1023_v13 = vadd.f32 %v1537_v35, %v2212_v50  ;;  %v1151_v36 = vadd.f32 %v1569_v45, %v2260_v18  ;;  %v1014_v43 = vpop.f32.mrb[9].mxu0  ;;  %v1142_v11 = vpop.f32.mrb[9].mxu1 }
 0x119   : > { %v1015_v37 = vadd.f32 %v1014_v43, %v2208_v48  ;;  %v1143_v38 = vadd.f32 %v1142_v11, %v2256_v16  ;;  %v1538_v39 = vpop.f32.mrb[10].mxu0  ;;  %v1570_v40 = vpop.f32.mrb[10].mxu1 }
 0x11a   : > { %1247 = vst [vmem:[%s2277_s11 + $0x50] sm:$0xff] %v1023_v13  ;;  %1279 = vst [vmem:[%s2277_s11 + $0x150] sm:$0xff] %v1151_v36  ;;  %v1026_v25 = vadd.f32 %v1538_v39, %v2210_v49  ;;  %v1154_v50 = vadd.f32 %v1570_v40, %v2258_v17  ;;  %v1017_v41 = vpop.f32.mrb[11].mxu0  ;;  %v1145_v18 = vpop.f32.mrb[11].mxu1 }
 0x11b   : > { %1245 = vst [vmem:[%s2277_s11 + $0x40] sm:$0xff] %v1015_v37  ;;  %1277 = vst [vmem:[%s2277_s11 + $0x140] sm:$0xff] %v1143_v38  ;;  %v1018_v9 = vadd.f32 %v1017_v41, %v2206_v47  ;;  %v1146_v48 = vadd.f32 %v1145_v18, %v2254_v15  ;;  %v2325_v16 = vpop.permute.xlu1 %612  ;;  %v608_v26 = vpop.permute.xlu0 %607 }
 0x11c   : > { %1248 = vst [vmem:[%s2277_s11 + $0x58] sm:$0xff] %v1026_v25  ;;  %1280 = vst [vmem:[%s2277_s11 + $0x158] sm:$0xff] %v1154_v50 }
 0x11d   : > { %1246 = vst [vmem:[%s2277_s11 + $0x48] sm:$0xff] %v1018_v9  ;;  %1278 = vst [vmem:[%s2277_s11 + $0x148] sm:$0xff] %v1146_v48 }
 0x11f   : > { %v1541_v49 = vpop.f32.mrb[12].mxu0  ;;  %v1573_v17 = vpop.f32.mrb[12].mxu1 }
 0x120   : > { %v1039_v27 = vadd.f32 %v1541_v49, %v2220_v54  ;;  %v1167_v42 = vadd.f32 %v1573_v17, %v2268_v22  ;;  %v1030_v47 = vpop.f32.mrb[13].mxu0  ;;  %v1158_v15 = vpop.f32.mrb[13].mxu1 }
 0x121   : > { %v1031_v7 = vadd.f32 %v1030_v47, %v2216_v52  ;;  %v1159_v28 = vadd.f32 %v1158_v15, %v2264_v20  ;;  %v1542_v29 = vpop.f32.mrb[14].mxu0  ;;  %v1574_v30 = vpop.f32.mrb[14].mxu1 }
 0x122   : > { %1251 = vst [vmem:[%s2277_s11 + $0x70] sm:$0xff] %v1039_v27  ;;  %1283 = vst [vmem:[%s2277_s11 + $0x170] sm:$0xff] %v1167_v42  ;;  %v1042_v31 = vadd.f32 %v1542_v29, %v2218_v53  ;;  %v1170_v54 = vadd.f32 %v1574_v30, %v2266_v21  ;;  %v1033_v32 = vpop.f32.mrb[15].mxu0  ;;  %v1161_v22 = vpop.f32.mrb[15].mxu1 }
 0x123   : > { %1249 = vst [vmem:[%s2277_s11 + $0x60] sm:$0xff] %v1031_v7  ;;  %1281 = vst [vmem:[%s2277_s11 + $0x160] sm:$0xff] %v1159_v28  ;;  %v1034_v33 = vadd.f32 %v1033_v32, %v2214_v51  ;;  %v1162_v52 = vadd.f32 %v1161_v22, %v2262_v19  ;;  %v2343_v20 = vpop.permute.xlu1 %622  ;;  %v618_v34 = vpop.permute.xlu0 %617 }
 0x124   : > { %1252 = vst [vmem:[%s2277_s11 + $0x78] sm:$0xff] %v1042_v31  ;;  %1284 = vst [vmem:[%s2277_s11 + $0x178] sm:$0xff] %v1170_v54 }
 0x125   : > { %1250 = vst [vmem:[%s2277_s11 + $0x68] sm:$0xff] %v1034_v33  ;;  %1282 = vst [vmem:[%s2277_s11 + $0x168] sm:$0xff] %v1162_v52 }
 0x127   : > { %v1545_v53 = vpop.f32.mrb[16].mxu0  ;;  %v1577_v21 = vpop.f32.mrb[16].mxu1 }
 0x128   : > { %v1055_v46 = vadd.f32 %v1545_v53, %v2228_v58  ;;  %v1183_v14 = vadd.f32 %v1577_v21, %v2291_v10  ;;  %v1046_v51 = vpop.f32.mrb[17].mxu0  ;;  %v1174_v19 = vpop.f32.mrb[17].mxu1 }
 0x129   : > { %v1047_v35 = vadd.f32 %v1046_v51, %v2224_v56  ;;  %v1175_v45 = vadd.f32 %v1174_v19, %v2275_v24  ;;  %v1546_v13 = vpop.f32.mrb[18].mxu0  ;;  %v1578_v36 = vpop.f32.mrb[18].mxu1 }
 0x12a   : > { %1255 = vst [vmem:[%s2277_s11 + $0x90] sm:$0xff] %v1055_v46  ;;  %1287 = vst [vmem:[%s2277_s11 + $0x190] sm:$0xff] %v1183_v14  ;;  %v1058_v43 = vadd.f32 %v1546_v13, %v2226_v57  ;;  %v1186_v58 = vadd.f32 %v1578_v36, %v2289_v8  ;;  %v1049_v11 = vpop.f32.mrb[19].mxu0  ;;  %v1177_v10 = vpop.f32.mrb[19].mxu1 }
 0x12b   : > { %1253 = vst [vmem:[%s2277_s11 + $0x80] sm:$0xff] %v1047_v35  ;;  %1285 = vst [vmem:[%s2277_s11 + $0x180] sm:$0xff] %v1175_v45  ;;  %v1050_v37 = vadd.f32 %v1049_v11, %v2222_v55  ;;  %v1178_v56 = vadd.f32 %v1177_v10, %v2273_v23  ;;  %v633_v24 = vpop.permute.xlu1 %632  ;;  %v628_v38 = vpop.permute.xlu0 %627 }
 0x12c   : > { %1256 = vst [vmem:[%s2277_s11 + $0x98] sm:$0xff] %v1058_v43  ;;  %1288 = vst [vmem:[%s2277_s11 + $0x198] sm:$0xff] %v1186_v58 }
 0x12d   : > { %1254 = vst [vmem:[%s2277_s11 + $0x88] sm:$0xff] %v1050_v37  ;;  %1286 = vst [vmem:[%s2277_s11 + $0x188] sm:$0xff] %v1178_v56 }
 0x12f   : > { %v1549_v39 = vpop.f32.mrb[20].mxu0  ;;  %v1581_v57 = vpop.f32.mrb[20].mxu1 }
 0x130   : > { %v1071_v8 = vadd.f32 %v1549_v39, %v2236_v62  ;;  %v1199_v40 = vadd.f32 %v1581_v57, %v608_v26  ;;  %v1062_v25 = vpop.f32.mrb[21].mxu0  ;;  %v1190_v55 = vpop.f32.mrb[21].mxu1 }
 0x131   : > { %v1063_v23 = vadd.f32 %v1062_v25, %v2232_v60  ;;  %v1191_v50 = vadd.f32 %v1190_v55, %v2305_v12  ;;  %v1550_v41 = vpop.f32.mrb[22].mxu0  ;;  %v1582_v18 = vpop.f32.mrb[22].mxu1 }
 0x132   : > { %1259 = vst [vmem:[%s2277_s11 + $0xb0] sm:$0xff] %v1071_v8  ;;  %1291 = vst [vmem:[%s2277_s11 + $0x1b0] sm:$0xff] %v1199_v40  ;;  %v1074_v9 = vadd.f32 %v1550_v41, %v2234_v61  ;;  %v1202_v48 = vadd.f32 %v1582_v18, %v2325_v16  ;;  %v1065_v62 = vpop.f32.mrb[23].mxu0  ;;  %v1193_v26 = vpop.f32.mrb[23].mxu1 }
 0x133   : > { %1257 = vst [vmem:[%s2277_s11 + $0xa0] sm:$0xff] %v1063_v23  ;;  %1289 = vst [vmem:[%s2277_s11 + $0x1a0] sm:$0xff] %v1191_v50  ;;  %v1066_v49 = vadd.f32 %v1065_v62, %v2230_v59  ;;  %v1194_v60 = vadd.f32 %v1193_v26, %v2303_v44  ;;  %v643_v12 = vpop.permute.xlu1 %642  ;;  %v638_v17 = vpop.permute.xlu0 %637 }
 0x134   : > { %1260 = vst [vmem:[%s2277_s11 + $0xb8] sm:$0xff] %v1074_v9  ;;  %1292 = vst [vmem:[%s2277_s11 + $0x1b8] sm:$0xff] %v1202_v48 }
 0x135   : > { %1258 = vst [vmem:[%s2277_s11 + $0xa8] sm:$0xff] %v1066_v49  ;;  %1290 = vst [vmem:[%s2277_s11 + $0x1a8] sm:$0xff] %v1194_v60 }
 0x137   : > { %v1553_v27 = vpop.f32.mrb[24].mxu0  ;;  %v1585_v61 = vpop.f32.mrb[24].mxu1 }
 0x138   : > { %v1087_v16 = vadd.f32 %v1553_v27, %v2244_v2  ;;  %v1215_v42 = vadd.f32 %v1585_v61, %v628_v38  ;;  %v1078_v47 = vpop.f32.mrb[25].mxu0  ;;  %v1206_v59 = vpop.f32.mrb[25].mxu1 }
 0x139   : > { %v1079_v44 = vadd.f32 %v1078_v47, %v2240_v0  ;;  %v1207_v15 = vadd.f32 %v1206_v59, %v618_v34  ;;  %v1554_v7 = vpop.f32.mrb[26].mxu0  ;;  %v1586_v28 = vpop.f32.mrb[26].mxu1 }
 0x13a   : > { %1263 = vst [vmem:[%s2277_s11 + $0xd0] sm:$0xff] %v1087_v16  ;;  %1295 = vst [vmem:[%s2277_s11 + $0x1d0] sm:$0xff] %v1215_v42  ;;  %v1090_v29 = vadd.f32 %v1554_v7, %v2242_v1  ;;  %v1218_v30 = vadd.f32 %v1586_v28, %v633_v24  ;;  %v1081_v2 = vpop.f32.mrb[27].mxu0  ;;  %v1209_v31 = vpop.f32.mrb[27].mxu1 }
 0x13b   : > { %1261 = vst [vmem:[%s2277_s11 + $0xc0] sm:$0xff] %v1079_v44  ;;  %1293 = vst [vmem:[%s2277_s11 + $0x1c0] sm:$0xff] %v1207_v15  ;;  %v1082_v54 = vadd.f32 %v1081_v2, %v2238_v63  ;;  %v1210_v0 = vadd.f32 %v1209_v31, %v2343_v20  ;;  %v653_v32 = vpop.permute.xlu1 %652  ;;  %v648_v22 = vpop.permute.xlu0 %647 }
 0x13c   : > { %1264 = vst [vmem:[%s2277_s11 + $0xd8] sm:$0xff] %v1090_v29  ;;  %1296 = vst [vmem:[%s2277_s11 + $0x1d8] sm:$0xff] %v1218_v30 }
 0x13d   : > { %1262 = vst [vmem:[%s2277_s11 + $0xc8] sm:$0xff] %v1082_v54  ;;  %1294 = vst [vmem:[%s2277_s11 + $0x1c8] sm:$0xff] %v1210_v0 }
 0x13f   : > { %v1557_v1 = vpop.f32.mrb[28].mxu0  ;;  %v1589_v33 = vpop.f32.mrb[28].mxu1 }
 0x140   : > { %v1103_v52 = vadd.f32 %v1557_v1, %v2252_v6  ;;  %v1231_v34 = vadd.f32 %v1589_v33, %v648_v22  ;;  %v1094_v63 = vpop.f32.mrb[29].mxu0  ;;  %v1222_v53 = vpop.f32.mrb[29].mxu1 }
 0x141   : > { %v1095_v20 = vadd.f32 %v1094_v63, %v2248_v4  ;;  %v1223_v21 = vadd.f32 %v1222_v53, %v638_v17  ;;  %v1558_v46 = vpop.f32.mrb[30].mxu0  ;;  %v1590_v14 = vpop.f32.mrb[30].mxu1 }
 0x142   : > { %1267 = vst [vmem:[%s2277_s11 + $0xf0] sm:$0xff] %v1103_v52  ;;  %1299 = vst [vmem:[%s2277_s11 + $0x1f0] sm:$0xff] %v1231_v34  ;;  %v1106_v51 = vadd.f32 %v1558_v46, %v2250_v5  ;;  %v1234_v6 = vadd.f32 %v1590_v14, %v653_v32  ;;  %v1097_v19 = vpop.f32.mrb[31].mxu0  ;;  %v1225_v35 = vpop.f32.mrb[31].mxu1 }
 0x143   : > { %1265 = vst [vmem:[%s2277_s11 + $0xe0] sm:$0xff] %v1095_v20  ;;  %1297 = vst [vmem:[%s2277_s11 + $0x1e0] sm:$0xff] %v1223_v21  ;;  %v1098_v4 = vadd.f32 %v1097_v19, %v2246_v3  ;;  %v1226_v45 = vadd.f32 %v1225_v35, %v643_v12 }
 0x144   : > { %1268 = vst [vmem:[%s2277_s11 + $0xf8] sm:$0xff] %v1106_v51  ;;  %1300 = vst [vmem:[%s2277_s11 + $0x1f8] sm:$0xff] %v1234_v6 }
 0x145   : > { %1266 = vst [vmem:[%s2277_s11 + $0xe8] sm:$0xff] %v1098_v4  ;;  %1298 = vst [vmem:[%s2277_s11 + $0x1e8] sm:$0xff] %v1226_v45 }
 0x146   : > { %1715 = shalt.err (!%p1712_p5)
}
 0x147   : > { %s1716_s5 = scalar_lea.hbm %s2399_s26, 8192  ;;  %s1720_s8 = scalar_lea.hbm %s2461_s3, 16384 }
 0x148   : > { %p1717_p6 = scmp.ne.s32.totalorder %s2399_s26, %s1716_s5  ;;  %p1721_p10 = scmp.lt.u32.totalorder %s2399_s26, %s2461_s3 }
 0x149   : > { %p1722_p11 = scmp.lt.u32.totalorder %s1720_s8, %s1716_s5  ;;  %p1724_p13 = scmp.lt.u32.totalorder %s1716_s5, %s2399_s26 }
 0x14a   : > { %p1718_p7 = pnand %p1717_p6, %p1846_p4 }
 0x14b   : > { %p1723_p12 = por %p1722_p11, %p1721_p10 }
 0x14c   : > { %p1719_p9 = pneg %p1718_p7 }
 0x14d   : > { %p1725_p0 = por %p1724_p13, %p1723_p12 }
 0x14f   : > { %p1726_p1 = pnand %p1725_p0, %p1719_p9 }
 0x151   : > { %1729 = shalt.err (!%p1726_p1)
}
 0x152   : > { %s1784_s10 = smov 128   ;;  %s1785_s11 = smov 8  }
 0x153   : > { %1604 = dma.vmem_to_hbm [thread:$0]  (%p1846_p4), %s2401_s19, 8192, %s2399_s26, %s2412_s27, %s1784_s10, %s1784_s10, %s1785_s11  }
 0x154 PF: > { %p1610_p2 = scmp.ge.s32.totalorder %s1780_s17, 2  ;;  %s1331_s18 = sand.u32 1, %s1760_s12  }
 0x155   : > { %s1332_s15 = scalar_lea.sflag [#allocation3], %s1331_s18 }
 0x156   : > { %p1607_p3 = pnand %p1610_p2, %p1853_p8 }
 0x158   : > { %1755 = dma.done.wait (!%p1607_p3), %s1332_s15, 8192  }
 0x159   : > { %1757 = vsyncadd (!%p1607_p3), %s1332_s15, 4294959104  ;;  %s16_s17 = sadd.s32 1, %s1780_s17   ;;  %s2464_s12 = smov %s1764_s13 }
 0x15a   : > { %p13_p5 = scmp.ge.s32.totalorder %s16_s17, 4   ;;  %s2465_s13 = smov %s1768_s14 }
 0x15b   : > { %s2466_s14 = smov %s1859_s25  ;;  %s2467_s15 = smov %s1776_s16 }
 0x15c   : > { %s2468_s16 = smov %s2470_s20  ;;  %15 = sbr.rel (!%p13_p5) target bundleno = 4 (0x4), region = 67 }
 0x163   :  { %1337 = vsyncpa [#allocation3], 1 }
 0x164   :  { %1339 = vsyncpa [#allocation3 + $0x1], 1 }

</bundles_post_ra>
